<compile_context>
chip_gen: v7x
topology: tpu7x:2x2x1
jax: 0.10.0
libtpu: 0.0.40
codegen_flags: <defaults>
</compile_context>

<pallas_src>
import jax
import jax.numpy as jnp
from jax.experimental import pallas as pl
from jax.experimental.pallas import tpu as pltpu

LANE = 128
SUBLANE = 8
MXU_PAD = 256   # v6e/v7x MXU is 2x256x256; 128-wide padding half-fills it (v5e: 128 ok).


def _round_up(x, m):
    return (x + m - 1) // m * m


def _cdiv(a, b):
    return (a + b - 1) // b


# ---------------------------------------------------------------------------
# Kernel
# ---------------------------------------------------------------------------
def multihead_kernel(feat_ref, w_ref, b_ref, gp_ref, expand_ref, scat_ref,
                     out_ref, acc_ref):
    k = pl.program_id(1)

    @pl.when(k == 0)
    def _():
        acc_ref[...] = jnp.zeros_like(acc_ref)

    # acc[b, t] += (features_tile @ W_block)[b, t]
    # operands may be bf16; accumulation stays f32 in VMEM scratch.
    acc_ref[...] += jnp.dot(feat_ref[...], w_ref[...],
                            preferred_element_type=jnp.float32)

    @pl.when(k == pl.num_programs(1) - 1)
    def _():
        hl = acc_ref[...] + b_ref[...]                     # f32 bias add
        # p[b, t] = group_probs[b, group_of_column(t)], reconstructed from the tiny
        # (tb, G_pad) tile via a one-hot matmul (exact in f32; replaces the former
        # full (B, T_pad) f32 HBM stream).
        p = jnp.dot(gp_ref[...], expand_ref[...],
                    preferred_element_type=jnp.float32)
        # Scatter-add over duplicate view_ids. Kept f32 end-to-end (second matmul is
        # tiny) so bf16 term rounding from the old version is gone.
        out_ref[...] = jnp.dot(hl * p, scat_ref[...],
                               preferred_element_type=jnp.float32)


# ---------------------------------------------------------------------------
# One-time packing (hoisted out of the per-call path)
# ---------------------------------------------------------------------------
def build_packed(params, group_to_labels, num_classes,
                 compute_dtype=jnp.bfloat16, mxu_pad=MXU_PAD):
    group_names = list(group_to_labels.keys())
    Ws, bs, col_group, col_view = [], [], [], []
    for i, g in enumerate(group_names):
        W, b = params[g]                 # W: (n_labels, D) as in torch.nn.Linear
        Ws.append(W.T)                   # -> (D, n_labels)
        bs.append(b)
        for view_id in group_to_labels[g]:
            col_group.append(i)
            col_view.append(view_id)

    W_all = jnp.concatenate(Ws, axis=1)              # (D, T)
    b_all = jnp.concatenate(bs)                      # (T,)
    D, T = W_all.shape
    G = len(group_names)
    T_pad = _round_up(max(T, mxu_pad), mxu_pad)      # MXU-dense packed axis
    C_pad = _round_up(max(num_classes, mxu_pad), mxu_pad)
    G_pad = _round_up(G, SUBLANE)

    # Zero-padded lanes/rows are exact no-ops through the whole chain.
    W_all = jnp.pad(W_all, ((0, 0), (0, T_pad - T))).astype(compute_dtype)
    b_all = jnp.pad(b_all, (0, T_pad - T))[None, :].astype(jnp.float32)

    rows = jnp.arange(T)
    expand = jnp.zeros((G_pad, T_pad), jnp.float32)
    expand = expand.at[jnp.array(col_group), rows].set(1.0)   # group -> columns
    scat = jnp.zeros((T_pad, C_pad), jnp.float32)
    scat = scat.at[rows, jnp.array(col_view)].set(1.0)        # column -> class
    return W_all, b_all, expand, scat


# ---------------------------------------------------------------------------
# Forward wrapper (jitted; packing tensors are closed-over constants)
# ---------------------------------------------------------------------------
def make_forward(packed, num_classes, block_b=None):
    W_all, b_all, expand, scat = packed
    D, T_pad = W_all.shape
    G_pad = expand.shape[0]
    C_pad = scat.shape[1]
    compute_dtype = W_all.dtype
    w_isz = jnp.dtype(compute_dtype).itemsize

    # --- per-generation VMEM budget ----------------------------------------
    try:
        vmem_cap = pltpu.get_tpu_info().vmem_capacity_bytes
    except Exception:
        vmem_cap = 64 << 20                          # conservative (v7x per-TC)
    budget = min(int(0.75 * vmem_cap), 100 << 20)    # ~48 MiB v7x, ~96 MiB v5e/v6e

    if block_b is None:
        # Bigger batch tiles on 128-MiB-VMEM chips (v5e/v6e), smaller on v7x.
        block_b = 512 if vmem_cap >= (100 << 20) else 256

    # Grid-invariant residents are single-buffered (one DMA each).
    resident = T_pad * 4 + G_pad * T_pad * 4 + T_pad * C_pad * 4

    def stream_bytes(tb, tk):
        return (2 * tb * tk * w_isz        # features, double-buffered
                + 2 * tb * G_pad * 4       # group-prob tile
                + 2 * tb * C_pad * 4       # output tile
                + tb * T_pad * 4)          # f32 accumulator scratch

    # --- K (feature-dim) split only if the full W_all misses the budget ----
    full_w = D * T_pad * w_isz
    if resident + full_w + stream_bytes(block_b, D) <= budget:
        tk, D_pad, nk = D, D, 1
    else:
        w_budget = max(budget - resident - stream_bytes(block_b, 0),
                       2 * LANE * T_pad * w_isz)
        tk = max(LANE, (w_budget // (2 * T_pad * w_isz)) // LANE * LANE)
        D_pad = _round_up(D, tk)
        nk = D_pad // tk
        W_all = jnp.pad(W_all, ((0, D_pad - D), (0, 0)))

    resident_mode = pl.Buffered(1)                      # invariant: no 2nd buffer
    w_mode = pl.Buffered(1) if nk == 1 else None        # streamed W -> default 2-deep

    @jax.jit
    def forward(features, group_probs):
        B = features.shape[0]
        G_in = group_probs.shape[1]

        # Batch tile: sublane-aligned, >=2 tiles when possible (feeds both v7x TCs),
        # derived from B so padding waste stays under one sublane.
        B8 = _round_up(B, SUBLANE)
        if B8 <= SUBLANE:
            tb = B8
        else:
            n_tiles = max(2, _cdiv(B8, block_b))
            tb = min(block_b, _round_up(_cdiv(B8, n_tiles), SUBLANE))
        B_pad = _round_up(B8, tb)
        nb = B_pad // tb

        feats = jnp.pad(features,
                        ((0, B_pad - B), (0, D_pad - D))).astype(compute_dtype)
        gp = jnp.pad(group_probs,
                     ((0, B_pad - B), (0, G_pad - G_in))).astype(jnp.float32)

        cost = pl.CostEstimate(
            flops=2 * B_pad * (D_pad * T_pad + G_pad * T_pad + T_pad * C_pad),
            transcendentals=0,
            bytes_accessed=(feats.size * w_isz + W_all.size * w_isz
                            + b_all.size * 4 + gp.size * 4
                            + expand.size * 4 + scat.size * 4
                            + B_pad * C_pad * 4),
        )

        vmem_needed = (resident
                       + (1 if nk == 1 else 2) * tk * T_pad * w_isz
                       + stream_bytes(tb, tk))
        vmem_limit = int(max(32 << 20,
                             min(budget, int(vmem_needed * 1.3) + (4 << 20))))

        out = pl.pallas_call(
            multihead_kernel,
            out_shape=jax.ShapeDtypeStruct((B_pad, C_pad), jnp.float32),
            grid_spec=pltpu.PrefetchScalarGridSpec(
                num_scalar_prefetch=0,
                grid=(nb, nk),
                in_specs=[
                    # streamed per step; bump to pl.Buffered(3) if a profile shows
                    # exposed DMA on mem-bound shapes.
                    pl.BlockSpec((tb, tk), lambda i, k: (i, k)),
                    pl.BlockSpec((tk, T_pad), lambda i, k: (k, 0),
                                 pipeline_mode=w_mode),
                    pl.BlockSpec((1, T_pad), lambda i, k: (0, 0),
                                 pipeline_mode=resident_mode),
                    pl.BlockSpec((tb, G_pad), lambda i, k: (i, 0)),
                    pl.BlockSpec((G_pad, T_pad), lambda i, k: (0, 0),
                                 pipeline_mode=resident_mode),
                    pl.BlockSpec((T_pad, C_pad), lambda i, k: (0, 0),
                                 pipeline_mode=resident_mode),
                ],
                out_specs=pl.BlockSpec((tb, C_pad), lambda i, k: (i, 0)),
                scratch_shapes=[pltpu.VMEM((tb, T_pad), jnp.float32)],
            ),
            compiler_params=pltpu.CompilerParams(
                dimension_semantics=("parallel", "arbitrary"),
                vmem_limit_bytes=vmem_limit),
            cost_estimate=cost,
        )(feats, W_all, b_all, gp, expand, scat)

        return out[:B, :num_classes]

    return forward


# ---------------------------------------------------------------------------
# Plain-JAX reference (transliteration of the PyTorch forward loop)
# ---------------------------------------------------------------------------
def reference(features, group_probs, params, group_to_labels, num_classes):
    B = features.shape[0]
    logits = jnp.zeros((B, num_classes), jnp.float32)
    for i, group in enumerate(group_to_labels.keys()):
        W, b = params[group]
        group_logits = features @ W.T + b
        probs = group_probs[:, i]
        for j, view_id in enumerate(group_to_labels[group]):
            logits = logits.at[:, view_id].add(probs * group_logits[:, j])
    return logits


if __name__ == "__main__":
    feature_dim = 32
    B = 8
    group_to_labels = {
        "animals": [0, 1, 2, 3],
        "vehicles": [4, 5, 6],
        "scenes": [7, 8, 9],
    }
    num_classes = max(max(v) for v in group_to_labels.values()) + 1
    num_groups = len(group_to_labels)

    key = jax.random.PRNGKey(0)
    keys = jax.random.split(key, 2 + 2 * num_groups)

    features = jax.random.normal(keys[0], (B, feature_dim), jnp.float32)
    group_probs = jax.nn.softmax(
        jax.random.normal(keys[1], (B, num_groups), jnp.float32), axis=-1)

    # Deterministic nn.Linear-style init for each head.
    params = {}
    bound = float(1.0 / (feature_dim ** 0.5))
    for idx, (g, labels) in enumerate(group_to_labels.items()):
        n = len(labels)
        W = jax.random.uniform(keys[2 + 2 * idx], (n, feature_dim),
                               jnp.float32, -bound, bound)
        b = jax.random.uniform(keys[3 + 2 * idx], (n,),
                               jnp.float32, -bound, bound)
        params[g] = (W, b)

    ref = reference(features, group_probs, params, group_to_labels, num_classes)

    # f32 path: bit-level check against the reference.
    fwd_f32 = make_forward(
        build_packed(params, group_to_labels, num_classes, compute_dtype=jnp.float32),
        num_classes)
    out_f32 = jax.block_until_ready(fwd_f32(features, group_probs))
    assert out_f32.shape == (B, num_classes)
    assert jnp.allclose(out_f32, ref, atol=1e-5, rtol=1e-5)

    # bf16 MXU path (perf path): f32 accumulate, f32 bias/p/scatter, loosened tol.
    fwd_bf16 = make_forward(
        build_packed(params, group_to_labels, num_classes, compute_dtype=jnp.bfloat16),
        num_classes)
    out_bf16 = jax.block_until_ready(fwd_bf16(features, group_probs))
    assert out_bf16.shape == (B, num_classes)
    assert jnp.allclose(out_bf16, ref, atol=5e-2, rtol=5e-2)

    print("KERNEL_OK")
</pallas_src>

<mosaic_0001>
module attributes {stable_mosaic.version = 11 : i64} {
  func.func @multihead_kernel(%arg0: i32, %arg1: i32, %arg2: memref<8x32xf32, #tpu.memory_space<vmem>>, %arg3: memref<32x256xf32, #tpu.memory_space<vmem>>, %arg4: memref<1x256xf32, #tpu.memory_space<vmem>>, %arg5: memref<8x8xf32, #tpu.memory_space<vmem>>, %arg6: memref<8x256xf32, #tpu.memory_space<vmem>>, %arg7: memref<256x256xf32, #tpu.memory_space<vmem>>, %arg8: memref<8x256xf32, #tpu.memory_space<vmem>>, %arg9: memref<8x256xf32, #tpu.memory_space<vmem>>) attributes {dimension_semantics = [#tpu.dimension_semantics<parallel>, #tpu.dimension_semantics<arbitrary>], iteration_bounds = array<i64: 1, 1>, scalar_prefetch = 0 : i64, scratch_operands = 1 : i64, tpu.core_type = #tpu.core_type<tc>, window_params = [{transform_indices = @transform_0, window_bounds = array<i64: 8, 32>}, {pipeline_mode = #tpu.pipeline_mode<synchronous>, transform_indices = @transform_1, window_bounds = array<i64: 32, 256>}, {pipeline_mode = #tpu.pipeline_mode<synchronous>, transform_indices = @transform_2, window_bounds = array<i64: 1, 256>}, {transform_indices = @transform_3, window_bounds = array<i64: 8, 8>}, {pipeline_mode = #tpu.pipeline_mode<synchronous>, transform_indices = @transform_4, window_bounds = array<i64: 8, 256>}, {pipeline_mode = #tpu.pipeline_mode<synchronous>, transform_indices = @transform_5, window_bounds = array<i64: 256, 256>}, {transform_indices = @transform_6, window_bounds = array<i64: 8, 256>}]} {
    %c0_i32 = arith.constant 0 : i32
    %0 = arith.cmpi eq, %arg1, %c0_i32 : i32
    %1 = arith.extui %0 : i1 to i32
    %c0_i32_0 = arith.constant 0 : i32
    %2 = arith.cmpi ne, %1, %c0_i32_0 : i32
    scf.if %2 {
      %cst_10 = arith.constant 0.000000e+00 : f32
      %12 = vector.broadcast %cst_10 : f32 to vector<8x256xf32>
      %c0_11 = arith.constant 0 : index
      %c0_12 = arith.constant 0 : index
      %13 = vector.load %arg9[%c0_11, %c0_12] : memref<8x256xf32, #tpu.memory_space<vmem>>, vector<8x256xf32>
      tpu.vector_store %arg9[%c0_11, %c0_12], %12 {strides = array<i32>} : memref<8x256xf32, #tpu.memory_space<vmem>>, vector<8x256xf32>,
    } else {
    }
    %c0 = arith.constant 0 : index
    %c0_1 = arith.constant 0 : index
    %3 = vector.load %arg9[%c0, %c0_1] : memref<8x256xf32, #tpu.memory_space<vmem>>, vector<8x256xf32>
    %c0_2 = arith.constant 0 : index
    %c0_3 = arith.constant 0 : index
    %4 = vector.load %arg2[%c0_2, %c0_3] : memref<8x32xf32, #tpu.memory_space<vmem>>, vector<8x32xf32>
    %c0_4 = arith.constant 0 : index
    %c0_5 = arith.constant 0 : index
    %5 = vector.load %arg3[%c0_4, %c0_5] : memref<32x256xf32, #tpu.memory_space<vmem>>, vector<32x256xf32>
    %cst = arith.constant dense<0.000000e+00> : vector<8x256xf32>
    %6 = tpu.matmul %4, %5, %cst {dimension_numbers = #tpu.dot_dimension_numbers<[1], [0], [0], [1], [0, 0, 1, 1], [], []>} : vector<8x32xf32>, vector<32x256xf32>, vector<8x256xf32> -> vector<8x256xf32>
    %7 = arith.addf %3, %6 : vector<8x256xf32>
    %c0_6 = arith.constant 0 : index
    %c0_7 = arith.constant 0 : index
    %8 = vector.load %arg9[%c0_6, %c0_7] : memref<8x256xf32, #tpu.memory_space<vmem>>, vector<8x256xf32>
    tpu.vector_store %arg9[%c0_6, %c0_7], %7 {strides = array<i32>} : memref<8x256xf32, #tpu.memory_space<vmem>>, vector<8x256xf32>,
    %c0_i32_8 = arith.constant 0 : i32
    %9 = arith.cmpi eq, %arg1, %c0_i32_8 : i32
    %10 = arith.extui %9 : i1 to i32
    %c0_i32_9 = arith.constant 0 : i32
    %11 = arith.cmpi ne, %10, %c0_i32_9 : i32
    scf.if %11 {
      %c0_10 = arith.constant 0 : index
      %c0_11 = arith.constant 0 : index
      %12 = vector.load %arg9[%c0_10, %c0_11] : memref<8x256xf32, #tpu.memory_space<vmem>>, vector<8x256xf32>
      %c0_12 = arith.constant 0 : index
      %c0_13 = arith.constant 0 : index
      %13 = vector.load %arg4[%c0_12, %c0_13] : memref<1x256xf32, #tpu.memory_space<vmem>>, vector<1x256xf32>
      %14 = vector.broadcast %13 : vector<1x256xf32> to vector<8x256xf32>
      %15 = arith.addf %12, %14 : vector<8x256xf32>
      %c0_14 = arith.constant 0 : index
      %c0_15 = arith.constant 0 : index
      %16 = vector.load %arg5[%c0_14, %c0_15] : memref<8x8xf32, #tpu.memory_space<vmem>>, vector<8x8xf32>
      %c0_16 = arith.constant 0 : index
      %c0_17 = arith.constant 0 : index
      %17 = vector.load %arg6[%c0_16, %c0_17] : memref<8x256xf32, #tpu.memory_space<vmem>>, vector<8x256xf32>
      %cst_18 = arith.constant dense<0.000000e+00> : vector<8x256xf32>
      %18 = tpu.matmul %16, %17, %cst_18 {dimension_numbers = #tpu.dot_dimension_numbers<[1], [0], [0], [1], [0, 0, 1, 1], [], []>} : vector<8x8xf32>, vector<8x256xf32>, vector<8x256xf32> -> vector<8x256xf32>
      %19 = arith.mulf %15, %18 : vector<8x256xf32>
      %c0_19 = arith.constant 0 : index
      %c0_20 = arith.constant 0 : index
      %20 = vector.load %arg7[%c0_19, %c0_20] : memref<256x256xf32, #tpu.memory_space<vmem>>, vector<256x256xf32>
      %cst_21 = arith.constant dense<0.000000e+00> : vector<8x256xf32>
      %21 = tpu.matmul %19, %20, %cst_21 {dimension_numbers = #tpu.dot_dimension_numbers<[1], [0], [0], [1], [0, 0, 1, 1], [], []>} : vector<8x256xf32>, vector<256x256xf32>, vector<8x256xf32> -> vector<8x256xf32>
      %c0_22 = arith.constant 0 : index
      %c0_23 = arith.constant 0 : index
      %22 = vector.load %arg8[%c0_22, %c0_23] : memref<8x256xf32, #tpu.memory_space<vmem>>, vector<8x256xf32>
      tpu.vector_store %arg8[%c0_22, %c0_23], %21 {strides = array<i32>} : memref<8x256xf32, #tpu.memory_space<vmem>>, vector<8x256xf32>,
    } else {
    }
    return
  }
  func.func @transform_0(%arg0: i32, %arg1: i32) -> (i32, i32) {
    %c0_i32 = arith.constant 0 : i32
    return %arg0, %arg1 : i32, i32
  }
  func.func @transform_1(%arg0: i32, %arg1: i32) -> (i32, i32) {
    %c0_i32 = arith.constant 0 : i32
    %c0_i32_0 = arith.constant 0 : i32
    return %arg1, %c0_i32 : i32, i32
  }
  func.func @transform_2(%arg0: i32, %arg1: i32) -> (i32, i32) {
    %c0_i32 = arith.constant 0 : i32
    %c0_i32_0 = arith.constant 0 : i32
    %c0_i32_1 = arith.constant 0 : i32
    return %c0_i32, %c0_i32_0 : i32, i32
  }
  func.func @transform_3(%arg0: i32, %arg1: i32) -> (i32, i32) {
    %c0_i32 = arith.constant 0 : i32
    %c0_i32_0 = arith.constant 0 : i32
    return %arg0, %c0_i32 : i32, i32
  }
  func.func @transform_4(%arg0: i32, %arg1: i32) -> (i32, i32) {
    %c0_i32 = arith.constant 0 : i32
    %c0_i32_0 = arith.constant 0 : i32
    %c0_i32_1 = arith.constant 0 : i32
    return %c0_i32, %c0_i32_0 : i32, i32
  }
  func.func @transform_5(%arg0: i32, %arg1: i32) -> (i32, i32) {
    %c0_i32 = arith.constant 0 : i32
    %c0_i32_0 = arith.constant 0 : i32
    %c0_i32_1 = arith.constant 0 : i32
    return %c0_i32, %c0_i32_0 : i32, i32
  }
  func.func @transform_6(%arg0: i32, %arg1: i32) -> (i32, i32) {
    %c0_i32 = arith.constant 0 : i32
    %c0_i32_0 = arith.constant 0 : i32
    return %arg0, %c0_i32 : i32, i32
  }
}

</mosaic_0001>

<bundles_post_ra>
// kernel: forward.1
= control target key start
LH: loop header
LB: loop body
LE: loop exit
PB: predicated region body
PF: predicated region fallthrough
CT: control target
= control target key end

     0   :  { %11 = vsyncpa [#allocation4], 0  ;;  %s601_s0 = inlined_call_operand.vmem [shape: f32[8,32], index: 0, kind: input, shape index: {}]   ;;  %s602_s1 = inlined_call_operand.hbm [shape: f32[32,256], index: 1, kind: input, shape index: {}]   ;;  %s603_s2 = inlined_call_operand.vmem [shape: f32[1,256], index: 2, kind: input, shape index: {}]   ;;  %s604_s3 = inlined_call_operand.vmem [shape: f32[8,8], index: 3, kind: input, shape index: {}]   ;;  %s605_s4 = inlined_call_operand.vmem [shape: f32[8,256], index: 4, kind: input, shape index: {}]   ;;  %s606_s5 = inlined_call_operand.hbm [shape: f32[256,256], index: 5, kind: input, shape index: {}]   ;;  %s607_s6 = inlined_call_operand.vmem [shape: f32[8,256], index: 6, kind: output, shape index: {}]  }
   0x1   :  { %12 = vsyncpa [#allocation6], 0  ;;  %s516_s21 = smov [#allocation3]   ;;  %s468_s25 = scalar_lea.hbm %s602_s1, 1024 }
   0x2   :  { %s20_s22 = sshll.u32 %s516_s21, 4  ;;  %p469_p0 = scmp.ne.s32.totalorder %s602_s1, %s468_s25  ;;  %s21_s22 = int_to_ptr.vmem [resolvable:$true] %s20_s22 }
   0x3   :  { %p472_p1 = scmp.lt.u32.totalorder %s468_s25, %s602_s1 }
   0x5   :  { %p474_p2 = pnand %p472_p1, %p469_p0 }
   0x7   :  { %477 = shalt.err (!%p474_p2)
}
   0x8   :  { %s478_s30 = scalar_lea.vmem %s21_s22, 1024  ;;  %p483_p4 = scmp.lt.s32.totalorder %s21_s22, %s21_s22 }
   0x9   :  { %p479_p3 = scmp.ne.s32.totalorder %s21_s22, %s478_s30  ;;  %p484_p5 = scmp.lt.s32.totalorder %s478_s30, %s478_s30 }
   0xb   :  { %p485_p6 = por %p484_p5, %p483_p4 }
   0xd   :  { %p486_p7 = pnand %p485_p6, %p479_p3 }
   0xf   :  { %489 = shalt.err (!%p486_p7)
}
  0x10   :  { %s517_s7 = smov 256   ;;  %s518_s8 = smov 16  }
  0x11   :  { %26 = dma.hbm_to_vmem [thread:$0]  %s602_s1, 1024, %s21_s22, [#allocation4], %s517_s7, %s517_s7, %s518_s8  }
  0x12   :  { %s519_s11 = smov [#allocation5]   ;;  %s490_s15 = scalar_lea.hbm %s606_s5, 8192 }
  0x13   :  { %s38_s12 = sshll.u32 %s519_s11, 4  ;;  %p491_p8 = scmp.ne.s32.totalorder %s606_s5, %s490_s15  ;;  %s39_s12 = int_to_ptr.vmem [resolvable:$true] %s38_s12 }
  0x14   :  { %p494_p9 = scmp.lt.u32.totalorder %s490_s15, %s606_s5 }
  0x16   :  { %p496_p10 = pnand %p494_p9, %p491_p8 }
  0x18   :  { %499 = shalt.err (!%p496_p10)
}
  0x19   :  { %s500_s20 = scalar_lea.vmem %s39_s12, 8192  ;;  %p505_p12 = scmp.lt.s32.totalorder %s39_s12, %s39_s12 }
  0x1a   :  { %p501_p11 = scmp.ne.s32.totalorder %s39_s12, %s500_s20  ;;  %p506_p13 = scmp.lt.s32.totalorder %s500_s20, %s500_s20 }
  0x1c   :  { %p507_p0 = por %p506_p13, %p505_p12 }
  0x1e   :  { %p508_p1 = pnand %p507_p0, %p501_p11 }
  0x20   :  { %511 = shalt.err (!%p508_p1)
}
  0x21   :  { %44 = dma.hbm_to_vmem [thread:$0]  %s606_s5, 8192, %s39_s12, [#allocation6], %s517_s7, %s517_s7, %s518_s8  }
  0x22   :  { %512 = dma.done.wait [#allocation4], 1024  }
  0x23   :  { %513 = vsyncadd [#allocation4], 4294966272 }
  0x24   :  { %514 = dma.done.wait [#allocation6], 8192  }
  0x25   :  { %515 = vsyncadd [#allocation6], 4294959104  ;;  %v520_v0 = vmov 0.0   ;;  %v61_v1 = vld [vmem:[#allocation3 + $0x8] sm:$0xff]  ;;  %v63_v2 = vld [vmem:[#allocation3 + $0x18] sm:$0xff]  ;;  %vm68_vm0 = vcmask 261120  }
  0x26   :  { %136 = vmatprep.mubr.f32.mxu0 %v520_v0  ;;  %v60_v3 = vld [vmem:[#allocation3] sm:$0xff]  ;;  %v391_v4 = vpack.c.bf16 %v63_v2, %v61_v1  ;;  %v62_v5 = vld [vmem:[#allocation3 + $0x10] sm:$0xff]  ;;  %v65_v6 = vld [vmem:[#allocation3 + $0x28] sm:$0xff]  ;;  %vm169_vm1 = vcmask 64512  }
  0x27   :  { %v67_v7 = vld [vmem:[#allocation3 + $0x38] sm:$0xff]  ;;  %v393_v8 = vpack.c.bf16 %v62_v5, %v60_v3  ;;  %v64_v10 = vld [vmem:[#allocation3 + $0x20] sm:$0xff]  ;;  %v66_v11 = vld [vmem:[#allocation3 + $0x30] sm:$0xff] }
  0x28   :  { %v395_v9 = vpack.c.bf16 %v67_v7, %v65_v6  ;;  %392 = vmatprep.subr.bf16.mxu0 %v391_v4  ;;  %v397_v12 = vpack.c.bf16 %v66_v11, %v64_v10  ;;  %v247_v13 = vld [vmem:[#allocation5 + $0x8] sm:$0xff]  ;;  %v249_v14 = vld [vmem:[#allocation5 + $0x18] sm:$0xff]  ;;  %v246_v15 = vld [vmem:[#allocation5] sm:$0xff] }
  0x29   :  { %394 = vmatpush1.bf16.msra.mxu0 %v393_v8  ;;  %v399_v16 = vpack.c.bf16 %v249_v14, %v247_v13  ;;  %v248_v17 = vld [vmem:[#allocation5 + $0x10] sm:$0xff]  ;;  %v251_v18 = vld [vmem:[#allocation5 + $0x28] sm:$0xff]  ;;  %v253_v19 = vld [vmem:[#allocation5 + $0x38] sm:$0xff] }
  0x2a   :  { %396 = vmatprep.subr.bf16.mxu0 %v395_v9  ;;  %v168_v20 = vld [vmem:[%s605_s4 + $0x8] sm:$0xff]  ;;  %v401_v21 = vpack.c.bf16 %v248_v17, %v246_v15  ;;  %v403_v22 = vpack.c.bf16 %v253_v19, %v251_v18  ;;  %v250_v23 = vld [vmem:[#allocation5 + $0x20] sm:$0xff]  ;;  %v252_v24 = vld [vmem:[#allocation5 + $0x30] sm:$0xff] }
  0x2b   :  { %400 = vmatprep.subr.bf16.mxu1 %v399_v16  ;;  %v255_v25 = vld [vmem:[#allocation5 + $0x48] sm:$0xff]  ;;  %v257_v26 = vld [vmem:[#allocation5 + $0x58] sm:$0xff]  ;;  %v59_v27 = vld [vmem:[%s601_s0] sm:$0xff]  ;;  %v405_v29 = vpack.c.bf16 %v252_v24, %v250_v23 }
  0x2c   :  { %402 = vmatpush1.bf16.msra.mxu1 %v401_v21  ;;  %v167_v28 = vld [vmem:[%s605_s4] sm:$0xff]  ;;  %v407_v30 = vpack.c.bf16 %v257_v26, %v255_v25  ;;  %v256_v32 = vld [vmem:[#allocation5 + $0x50] sm:$0xff]  ;;  %v259_v33 = vld [vmem:[#allocation5 + $0x68] sm:$0xff] }
  0x2d   :  { %398 = vmatpush1.bf16.msra.mxu0 %v397_v12  ;;  %404 = vmatprep.subr.bf16.mxu1 %v403_v22  ;;  %v254_v31 = vld [vmem:[#allocation5 + $0x40] sm:$0xff]  ;;  %v261_v34 = vld [vmem:[#allocation5 + $0x78] sm:$0xff]  ;;  %v260_v39 = vld [vmem:[#allocation5 + $0x70] sm:$0xff] }
  0x2e   :  { %173 = vmatprep.subr.mxu0 %v168_v20  ;;  %v166_v35 = vld [vmem:[%s604_s3] sm:$0xff]  ;;  %v409_v36 = vpack.c.bf16 %v256_v32, %v254_v31  ;;  %v411_v37 = vpack.c.bf16 %v261_v34, %v259_v33  ;;  %v263_v40 = vld [vmem:[#allocation5 + $0x88] sm:$0xff]  ;;  %v265_v41 = vld [vmem:[#allocation5 + $0x98] sm:$0xff] }
  0x2f   :  { %v258_v38 = vld [vmem:[#allocation5 + $0x60] sm:$0xff]  ;;  %v415_v43 = vpack.c.bf16 %v265_v41, %v263_v40  ;;  %v264_v45 = vld [vmem:[#allocation5 + $0x90] sm:$0xff]  ;;  %v267_v46 = vld [vmem:[#allocation5 + $0xa8] sm:$0xff] }
  0x30   :  { %389 = vmatmul.mubr.msk.f32.vlgmr.msra.gmra.mrb[0].mxu0 %vm68_vm0, %v59_v27  ;;  %406 = vmatpush1.bf16.msra.mxu1 %v405_v29  ;;  %v413_v42 = vpack.c.bf16 %v260_v39, %v258_v38  ;;  %v262_v44 = vld [vmem:[#allocation5 + $0x80] sm:$0xff]  ;;  %v269_v47 = vld [vmem:[#allocation5 + $0xb8] sm:$0xff]  ;;  %v268_v51 = vld [vmem:[#allocation5 + $0xb0] sm:$0xff] }
  0x31   :  { %174 = vmatpush1.msra.mxu0 %v167_v28  ;;  %237 = vmatprep.mubr.f32.mxu0 %v520_v0  ;;  %v417_v48 = vpack.c.bf16 %v264_v45, %v262_v44  ;;  %v419_v49 = vpack.c.bf16 %v269_v47, %v267_v46  ;;  %v266_v50 = vld [vmem:[#allocation5 + $0xa0] sm:$0xff]  ;;  %v271_v52 = vld [vmem:[#allocation5 + $0xc8] sm:$0xff]  ;;  %v273_v53 = vld [vmem:[#allocation5 + $0xd8] sm:$0xff] }
  0x32   :  { %408 = vmatprep.subr.bf16.mxu1 %v407_v30  ;;  %v421_v54 = vpack.c.bf16 %v268_v51, %v266_v50  ;;  %v423_v55 = vpack.c.bf16 %v273_v53, %v271_v52  ;;  %v270_v56 = vld [vmem:[#allocation5 + $0xc0] sm:$0xff]  ;;  %v272_v57 = vld [vmem:[#allocation5 + $0xd0] sm:$0xff]  ;;  %v275_v58 = vld [vmem:[#allocation5 + $0xe8] sm:$0xff] }
  0x33   :  { %v277_v59 = vld [vmem:[#allocation5 + $0xf8] sm:$0xff]  ;;  %v425_v60 = vpack.c.bf16 %v272_v57, %v270_v56  ;;  %v274_v62 = vld [vmem:[#allocation5 + $0xe0] sm:$0xff]  ;;  %v276_v63 = vld [vmem:[#allocation5 + $0xf0] sm:$0xff] }
  0x34   :  { %390 = vmatmul.mubr.msk.f32.vlgmr.msra.gmra.mrb[2].mxu0 %vm169_vm1, %v166_v35  ;;  %410 = vmatpush1.bf16.msra.mxu1 %v409_v36  ;;  %v427_v61 = vpack.c.bf16 %v277_v59, %v275_v58  ;;  %v279_v0 = vld [vmem:[#allocation5 + $0x108] sm:$0xff]  ;;  %v281_v1 = vld [vmem:[#allocation5 + $0x118] sm:$0xff]  ;;  %v429_v2 = vpack.c.bf16 %v276_v63, %v274_v62  ;;  %v278_v4 = vld [vmem:[#allocation5 + $0x100] sm:$0xff] }
  0x35   :  { %412 = vmatprep.subr.bf16.mxu1 %v411_v37  ;;  %v431_v3 = vpack.c.bf16 %v281_v1, %v279_v0  ;;  %v280_v5 = vld [vmem:[#allocation5 + $0x110] sm:$0xff]  ;;  %v283_v6 = vld [vmem:[#allocation5 + $0x128] sm:$0xff]  ;;  %v285_v7 = vld [vmem:[#allocation5 + $0x138] sm:$0xff] }
  0x36   :  { %v433_v8 = vpack.c.bf16 %v280_v5, %v278_v4  ;;  %v435_v9 = vpack.c.bf16 %v285_v7, %v283_v6  ;;  %v282_v10 = vld [vmem:[#allocation5 + $0x120] sm:$0xff]  ;;  %v284_v11 = vld [vmem:[#allocation5 + $0x130] sm:$0xff]  ;;  %v287_v12 = vld [vmem:[#allocation5 + $0x148] sm:$0xff] }
  0x37   :  { %v289_v13 = vld [vmem:[#allocation5 + $0x158] sm:$0xff]  ;;  %v437_v14 = vpack.c.bf16 %v284_v11, %v282_v10  ;;  %v286_v16 = vld [vmem:[#allocation5 + $0x140] sm:$0xff]  ;;  %v288_v17 = vld [vmem:[#allocation5 + $0x150] sm:$0xff] }
  0x38   :  { %414 = vmatpush1.bf16.msra.mxu1 %v413_v42  ;;  %v439_v15 = vpack.c.bf16 %v289_v13, %v287_v12  ;;  %v291_v18 = vld [vmem:[#allocation5 + $0x168] sm:$0xff]  ;;  %v293_v19 = vld [vmem:[#allocation5 + $0x178] sm:$0xff]  ;;  %v441_v20 = vpack.c.bf16 %v288_v17, %v286_v16  ;;  %v290_v22 = vld [vmem:[#allocation5 + $0x160] sm:$0xff] }
  0x39   :  { %416 = vmatprep.subr.bf16.mxu1 %v415_v43  ;;  %v443_v21 = vpack.c.bf16 %v293_v19, %v291_v18  ;;  %v292_v23 = vld [vmem:[#allocation5 + $0x170] sm:$0xff]  ;;  %v295_v24 = vld [vmem:[#allocation5 + $0x188] sm:$0xff]  ;;  %v297_v25 = vld [vmem:[#allocation5 + $0x198] sm:$0xff] }
  0x3a   :  { %v445_v26 = vpack.c.bf16 %v292_v23, %v290_v22  ;;  %v447_v27 = vpack.c.bf16 %v297_v25, %v295_v24  ;;  %v294_v28 = vld [vmem:[#allocation5 + $0x180] sm:$0xff]  ;;  %v296_v29 = vld [vmem:[#allocation5 + $0x190] sm:$0xff]  ;;  %v299_v30 = vld [vmem:[#allocation5 + $0x1a8] sm:$0xff] }
  0x3b   :  { %v301_v31 = vld [vmem:[#allocation5 + $0x1b8] sm:$0xff]  ;;  %v449_v32 = vpack.c.bf16 %v296_v29, %v294_v28  ;;  %v298_v34 = vld [vmem:[#allocation5 + $0x1a0] sm:$0xff]  ;;  %v300_v35 = vld [vmem:[#allocation5 + $0x1b0] sm:$0xff] }
  0x3c   :  { %418 = vmatpush1.bf16.msra.mxu1 %v417_v48  ;;  %v451_v33 = vpack.c.bf16 %v301_v31, %v299_v30  ;;  %v453_v36 = vpack.c.bf16 %v300_v35, %v298_v34  ;;  %v303_v37 = vld [vmem:[#allocation5 + $0x1c8] sm:$0xff]  ;;  %v305_v38 = vld [vmem:[#allocation5 + $0x1d8] sm:$0xff]  ;;  %v302_v40 = vld [vmem:[#allocation5 + $0x1c0] sm:$0xff] }
  0x3d   :  { %420 = vmatprep.subr.bf16.mxu1 %v419_v49  ;;  %v455_v39 = vpack.c.bf16 %v305_v38, %v303_v37  ;;  %v304_v41 = vld [vmem:[#allocation5 + $0x1d0] sm:$0xff]  ;;  %v307_v43 = vld [vmem:[#allocation5 + $0x1e8] sm:$0xff]  ;;  %v309_v44 = vld [vmem:[#allocation5 + $0x1f8] sm:$0xff]  ;;  %v154_v49 = vlaneseq }
  0x3e   :  { %v457_v42 = vpack.c.bf16 %v304_v41, %v302_v40  ;;  %v459_v45 = vpack.c.bf16 %v309_v44, %v307_v43  ;;  %v306_v46 = vld [vmem:[#allocation5 + $0x1e0] sm:$0xff]  ;;  %v308_v47 = vld [vmem:[#allocation5 + $0x1f0] sm:$0xff] }
  0x3f   :  { %v461_v48 = vpack.c.bf16 %v308_v47, %v306_v46  ;;  %v155_v50 = vshrl.u32 %v154_v49, 7  ;;  %v152_v52 = vld [vmem:[%s603_s2] sm:$0x3] }
  0x40   :  { %422 = vmatpush1.bf16.msra.mxu1 %v421_v54 }
  0x41   :  { %424 = vmatprep.subr.bf16.mxu1 %v423_v55  ;;  %v156_v51 = vsub.s32 0, %v155_v50  ;;  %v160_v53 = vsub.s32 1, %v155_v50 }
  0x43   :  { %v157_v54 = vrot.slane %v152_v52, %v156_v51  ;;  %v161_v56 = vrot.slane %v152_v52, %v160_v53 }
  0x44   :  { %426 = vmatpush1.bf16.msra.mxu1 %v425_v60 }
  0x45   :  { %428 = vmatprep.subr.bf16.mxu1 %v427_v61 }
  0x48   :  { %430 = vmatpush1.bf16.msra.mxu1 %v429_v2 }
  0x49   :  { %432 = vmatprep.subr.bf16.mxu1 %v431_v3 }
  0x4c   :  { %434 = vmatpush1.bf16.msra.mxu1 %v433_v8 }
  0x4d   :  { %436 = vmatprep.subr.bf16.mxu1 %v435_v9 }
  0x50   :  { %438 = vmatpush1.bf16.msra.mxu1 %v437_v14 }
  0x51   :  { %440 = vmatprep.subr.bf16.mxu1 %v439_v15 }
  0x54   :  { %442 = vmatpush1.bf16.msra.mxu1 %v441_v20 }
  0x55   :  { %444 = vmatprep.subr.bf16.mxu1 %v443_v21 }
  0x58   :  { %446 = vmatpush1.bf16.msra.mxu1 %v445_v26 }
  0x59   :  { %448 = vmatprep.subr.bf16.mxu1 %v447_v27 }
  0x5c   :  { %450 = vmatpush1.bf16.msra.mxu1 %v449_v32 }
  0x5d   :  { %452 = vmatprep.subr.bf16.mxu1 %v451_v33 }
  0x60   :  { %454 = vmatpush1.bf16.msra.mxu1 %v453_v36 }
  0x61   :  { %456 = vmatprep.subr.bf16.mxu1 %v455_v39 }
  0x64   :  { %458 = vmatpush1.bf16.msra.mxu1 %v457_v42 }
  0x65   :  { %460 = vmatprep.subr.bf16.mxu1 %v459_v45 }
  0x68   :  { %462 = vmatpush1.bf16.msra.mxu1 %v461_v48 }
 0x103   :  { %v138_v55 = vpop.f32.mrb[0].mxu0 }
 0x104   :  { %v140_v57 = vpop.f32.mrb[1].mxu0  ;;  %v164_v58 = vadd.f32 %v157_v54, %v138_v55 }
 0x105   :  { %v165_v59 = vadd.f32 %v161_v56, %v140_v57 }
 0x107   :  { %v239_v60 = vpop.f32.mrb[2].mxu0 }
 0x108   :  { %v244_v61 = vmul.f32 %v239_v60, %v164_v58  ;;  %v241_v62 = vpop.f32.mrb[3].mxu0 }
 0x109   :  { %v245_v63 = vmul.f32 %v241_v62, %v165_v59 }
 0x10b   :  { %374 = vmatprep.mubr.f32.mxu1 %v245_v63 }
 0x10c   :  { %375 = vmatmul.mubr.f32.vlgmr.msra.gmra.mrb[0].mxu1 %v244_v61 }
 0x1df   :  { %v376_v0 = vpop.f32.mrb[0].mxu1 }
 0x1e0   :  { %381 = vst [vmem:[%s607_s6] sm:$0xff] %v376_v0  ;;  %v378_v1 = vpop.f32.mrb[1].mxu1 }
 0x1e1   :  { %382 = vst [vmem:[%s607_s6 + $0x8] sm:$0xff] %v378_v1 }
 0x1e2   :  { %387 = vsyncpa [#allocation4], 1 }
 0x1e3   :  { %388 = vsyncpa [#allocation6], 1 }

</bundles_post_ra>
